<compile_context>
chip_gen: v5e
topology: v5e:2x2
jax: 0.10.0
libtpu: 0.0.40
codegen_flags: <defaults>
</compile_context>

<pallas_src>
import functools

import jax
import jax.numpy as jnp
import numpy as np
from jax import lax
from jax.experimental import pallas as pl
from jax.experimental.pallas import tpu as pltpu


def _round_up(x, m):
    return (x + m - 1) // m * m


def _cdiv(a, b):
    return (a + b - 1) // b


def _mlp_head_kernel(rows_ref, w_ref, params_ref, o_ref, *, eps: float):
    # rows_ref   : (bm, tk)   gathered token rows (matmul dtype, e.g. bf16)
    # w_ref      : (tk, N)    weight K-tile (matmul dtype), streamed over k
    # params_ref : (8, N) f32 row0 = linear bias, row1 = LN gamma, row2 = LN beta
    # o_ref      : (bm, N) f32 output block; resident across the k axis, used
    #                          directly as the accumulator (no scratch).
    k = pl.program_id(1)

    @pl.when(k == 0)
    def _():
        o_ref[...] = jnp.zeros_like(o_ref)

    o_ref[...] += jnp.dot(rows_ref[...], w_ref[...],
                          preferred_element_type=jnp.float32)

    @pl.when(k == pl.num_programs(1) - 1)
    def _():
        bias = params_ref[0:1, :]
        gamma = params_ref[1:2, :]
        beta = params_ref[2:3, :]
        # Linear bias
        y = o_ref[...] + bias                               # (bm, N) f32
        # LayerNorm (biased variance, matches the PyTorch LayerNorm)
        u = jnp.mean(y, axis=-1, keepdims=True)
        d = y - u
        s = jnp.mean(d * d, axis=-1, keepdims=True)
        yn = d * lax.rsqrt(s + eps)
        # affine + ReLU, written in place
        o_ref[...] = jnp.maximum(gamma * yn + beta, 0.0)


def pack_mlp_head_params(w, b, gamma, beta, *, tk=8192,
                         matmul_dtype=jnp.bfloat16):
    """One-time (init-time) weight preparation -- hoisted out of the call path.

    w: [V, N] (= PyTorch linear.weight.T), b/gamma/beta: [N].
    Returns (w_packed [V_pad, N] in matmul_dtype, params [8, N] f32, tk).
    """
    V, N = w.shape
    assert N % 128 == 0, "output width must be lane-aligned (module uses 256)"
    V128 = _round_up(V, 128)
    tk = min(_round_up(tk, 128), V128)
    n_k = _cdiv(V128, tk)
    tk = _round_up(_cdiv(V128, n_k), 128)      # minimize zero-padding of W
    V_pad = n_k * tk

    w_p = jnp.zeros((V_pad, N), matmul_dtype).at[:V, :].set(
        w.astype(matmul_dtype))

    params = jnp.zeros((8, N), jnp.float32)
    params = params.at[0].set(b.astype(jnp.float32))
    params = params.at[1].set(gamma.astype(jnp.float32))
    params = params.at[2].set(beta.astype(jnp.float32))
    return w_p, params, int(tk)


def gpt2_similarity_head(x, length, w_packed, params, tk, *, n_in=None,
                         eps=1e-5, matmul_dtype=jnp.bfloat16,
                         vmem_limit_bytes=48 * 1024 * 1024):
    """x: [B, S, V] f32, length: [B] int, (w_packed, params, tk) from
    pack_mlp_head_params.  Returns [B, N] f32."""
    B, S, V = x.shape
    if n_in is not None:
        V = n_in
    V_pad, N = w_packed.shape
    assert V <= V_pad and V_pad % tk == 0
    assert V <= x.shape[-1]

    # --- gather the classification rows (tiny: B*V elements) ---------------
    # TODO(synk): the PyTorch module indexes x[i, length[i]] directly; if
    # `length` is a token count the index would be length-1 upstream.  Clamp
    # defensively to the valid range (prevents OOB, not the off-by-one).
    idx = jnp.clip(length.astype(jnp.int32), 0, S - 1)
    rows = jnp.take_along_axis(x, idx[:, None, None], axis=1)[:, 0, :]  # (B, V)

    # --- choose batch block: whole batch in ONE block if VMEM allows --------
    item = jnp.dtype(matmul_dtype).itemsize
    B_pad = _round_up(max(B, 1), 16)
    budget = int(vmem_limit_bytes * 0.85)

    def fits(bm_):
        return (2 * (bm_ * tk + tk * N) * item     # double-buffered rows + W
                + 2 * bm_ * N * 4                  # f32 output block buffers
                + 2 * 8 * N * 4) <= budget         # packed params

    bm = B_pad
    while bm > 16 and not fits(bm):
        bm = _round_up(max(16, bm // 2), 16)
    n_b = _cdiv(B_pad, bm)                         # == 1 in the common case
    B_pad = n_b * bm
    n_k = V_pad // tk

    rows_p = jnp.zeros((B_pad, V_pad), matmul_dtype).at[:B, :V].set(
        rows.astype(matmul_dtype))

    grid_spec = pltpu.PrefetchScalarGridSpec(
        num_scalar_prefetch=0,
        grid=(n_b, n_k),
        in_specs=[
            pl.BlockSpec((bm, tk), lambda i, k: (i, k)),   # gathered rows
            pl.BlockSpec((tk, N), lambda i, k: (k, 0)),    # W streamed over k
            pl.BlockSpec((8, N), lambda i, k: (0, 0)),     # packed b/gamma/beta
        ],
        out_specs=pl.BlockSpec((bm, N), lambda i, k: (i, 0)),
    )

    cost = pl.CostEstimate(
        flops=2 * B_pad * V_pad * N,
        transcendentals=0,
        bytes_accessed=(n_b * V_pad * N + B_pad * V_pad) * item
                       + B_pad * N * 4 + 8 * N * 4,
    )

    out = pl.pallas_call(
        functools.partial(_mlp_head_kernel, eps=eps),
        out_shape=jax.ShapeDtypeStruct((B_pad, N), jnp.float32),
        grid_spec=grid_spec,
        compiler_params=pltpu.CompilerParams(
            dimension_semantics=("parallel", "arbitrary"),
            # 48 MiB: inside v7x's 64 MiB physical VMEM, well inside v5e/v6e.
            vmem_limit_bytes=vmem_limit_bytes,
        ),
        cost_estimate=cost,
    )(rows_p, w_packed, params)

    return out[:B]


def _reference(x, length, w, b, gamma, beta, eps=1e-5):
    B, S, _ = x.shape
    idx = jnp.clip(length.astype(jnp.int32), 0, S - 1)
    rows = x[jnp.arange(B), idx]                    # (B, V)
    y = rows @ w + b
    u = y.mean(-1, keepdims=True)
    s = ((y - u) ** 2).mean(-1, keepdims=True)
    yn = (y - u) / jnp.sqrt(s + eps)
    return jnp.maximum(gamma * yn + beta, 0.0)


if __name__ == "__main__":
    # Small, module-consistent shapes: batch=2, seq=8, "vocab" V=1024, out=256.
    B, S, V, N = 2, 8, 1024, 256
    key = jax.random.PRNGKey(0)
    kx, kw, kb, kg, kbe, klen = jax.random.split(key, 6)

    # Stand-in GPT2 backbone output logits (deterministic).
    x = jax.random.normal(kx, (B, S, V), dtype=jnp.float32)
    length = jax.random.randint(klen, (B,), 0, S, dtype=jnp.int32)

    # MLP parameters (W stored as [V, N] = PyTorch weight.T).
    w = jax.random.normal(kw, (V, N), dtype=jnp.float32) * (1.0 / np.sqrt(V))
    b = jax.random.normal(kb, (N,), dtype=jnp.float32) * 0.01
    gamma = 1.0 + 0.1 * jax.random.normal(kg, (N,), dtype=jnp.float32)
    beta = 0.05 * jax.random.normal(kbe, (N,), dtype=jnp.float32)

    ref = _reference(x, length, w, b, gamma, beta)

    # f32 matmul path with small tk (4 k-steps) -> exercises the k pipeline;
    # bit-tight check of the kernel numerics.
    w_p32, params32, tk32 = pack_mlp_head_params(
        w, b, gamma, beta, tk=256, matmul_dtype=jnp.float32)
    out_f32 = gpt2_similarity_head(x, length, w_p32, params32, tk32, n_in=V,
                                   matmul_dtype=jnp.float32)
    out_f32 = jax.block_until_ready(out_f32)
    np.testing.assert_allclose(np.asarray(out_f32), np.asarray(ref),
                               rtol=1e-5, atol=1e-5)

    # bf16 matmul path (production default): weights cast/padded once here and
    # reused across calls; loose tolerance for bf16 operands.
    w_pbf, paramsbf, tkbf = pack_mlp_head_params(
        w, b, gamma, beta, tk=8192, matmul_dtype=jnp.bfloat16)
    out_bf16 = gpt2_similarity_head(x, length, w_pbf, paramsbf, tkbf, n_in=V,
                                    matmul_dtype=jnp.bfloat16)
    out_bf16 = jax.block_until_ready(out_bf16)
    np.testing.assert_allclose(np.asarray(out_bf16), np.asarray(ref),
                               rtol=3e-2, atol=3e-2)

    # Second call with the same packed weights (no re-pack): cached-weight path.
    out_bf16_2 = gpt2_similarity_head(x, length, w_pbf, paramsbf, tkbf, n_in=V)
    out_bf16_2 = jax.block_until_ready(out_bf16_2)
    np.testing.assert_allclose(np.asarray(out_bf16_2), np.asarray(out_bf16))

    print("KERNEL_OK")
</pallas_src>

<mosaic_0001>
module attributes {stable_mosaic.version = 11 : i64} {
  func.func @_mlp_head_kernel(%arg0: i32, %arg1: i32, %arg2: memref<16x256xf32, #tpu.memory_space<vmem>>, %arg3: memref<256x256xf32, #tpu.memory_space<vmem>>, %arg4: memref<8x256xf32, #tpu.memory_space<vmem>>, %arg5: memref<16x256xf32, #tpu.memory_space<vmem>>) attributes {dimension_semantics = [#tpu.dimension_semantics<parallel>, #tpu.dimension_semantics<arbitrary>], iteration_bounds = array<i64: 1, 4>, scalar_prefetch = 0 : i64, scratch_operands = 0 : i64, tpu.core_type = #tpu.core_type<tc>, window_params = [{transform_indices = @transform_0, window_bounds = array<i64: 16, 256>}, {transform_indices = @transform_1, window_bounds = array<i64: 256, 256>}, {pipeline_mode = #tpu.pipeline_mode<synchronous>, transform_indices = @transform_2, window_bounds = array<i64: 8, 256>}, {transform_indices = @transform_3, window_bounds = array<i64: 16, 256>}]} {
    %c0_i32 = arith.constant 0 : i32
    %0 = arith.cmpi eq, %arg1, %c0_i32 : i32
    %1 = arith.extui %0 : i1 to i32
    %c0_i32_0 = arith.constant 0 : i32
    %2 = arith.cmpi ne, %1, %c0_i32_0 : i32
    scf.if %2 {
      %cst_9 = arith.constant 0.000000e+00 : f32
      %12 = vector.broadcast %cst_9 : f32 to vector<16x256xf32>
      %c0_10 = arith.constant 0 : index
      %c0_11 = arith.constant 0 : index
      %13 = vector.load %arg5[%c0_10, %c0_11] : memref<16x256xf32, #tpu.memory_space<vmem>>, vector<16x256xf32>
      tpu.vector_store %arg5[%c0_10, %c0_11], %12 {strides = array<i32>} : memref<16x256xf32, #tpu.memory_space<vmem>>, vector<16x256xf32>,
    } else {
    }
    %c0 = arith.constant 0 : index
    %c0_1 = arith.constant 0 : index
    %3 = vector.load %arg5[%c0, %c0_1] : memref<16x256xf32, #tpu.memory_space<vmem>>, vector<16x256xf32>
    %c0_2 = arith.constant 0 : index
    %c0_3 = arith.constant 0 : index
    %4 = vector.load %arg2[%c0_2, %c0_3] : memref<16x256xf32, #tpu.memory_space<vmem>>, vector<16x256xf32>
    %c0_4 = arith.constant 0 : index
    %c0_5 = arith.constant 0 : index
    %5 = vector.load %arg3[%c0_4, %c0_5] : memref<256x256xf32, #tpu.memory_space<vmem>>, vector<256x256xf32>
    %cst = arith.constant dense<0.000000e+00> : vector<16x256xf32>
    %6 = tpu.matmul %4, %5, %cst {dimension_numbers = #tpu.dot_dimension_numbers<[1], [0], [0], [1], [0, 0, 1, 1], [], []>} : vector<16x256xf32>, vector<256x256xf32>, vector<16x256xf32> -> vector<16x256xf32>
    %7 = arith.addf %3, %6 : vector<16x256xf32>
    %c0_6 = arith.constant 0 : index
    %c0_7 = arith.constant 0 : index
    %8 = vector.load %arg5[%c0_6, %c0_7] : memref<16x256xf32, #tpu.memory_space<vmem>>, vector<16x256xf32>
    tpu.vector_store %arg5[%c0_6, %c0_7], %7 {strides = array<i32>} : memref<16x256xf32, #tpu.memory_space<vmem>>, vector<16x256xf32>,
    %c3_i32 = arith.constant 3 : i32
    %9 = arith.cmpi eq, %arg1, %c3_i32 : i32
    %10 = arith.extui %9 : i1 to i32
    %c0_i32_8 = arith.constant 0 : i32
    %11 = arith.cmpi ne, %10, %c0_i32_8 : i32
    scf.if %11 {
      %c0_9 = arith.constant 0 : index
      %c0_10 = arith.constant 0 : index
      %12 = vector.load %arg4[%c0_9, %c0_10] : memref<8x256xf32, #tpu.memory_space<vmem>>, vector<1x256xf32>
      %c1 = arith.constant 1 : index
      %c0_11 = arith.constant 0 : index
      %13 = vector.load %arg4[%c1, %c0_11] : memref<8x256xf32, #tpu.memory_space<vmem>>, vector<1x256xf32>
      %c2 = arith.constant 2 : index
      %c0_12 = arith.constant 0 : index
      %14 = vector.load %arg4[%c2, %c0_12] : memref<8x256xf32, #tpu.memory_space<vmem>>, vector<1x256xf32>
      %c0_13 = arith.constant 0 : index
      %c0_14 = arith.constant 0 : index
      %15 = vector.load %arg5[%c0_13, %c0_14] : memref<16x256xf32, #tpu.memory_space<vmem>>, vector<16x256xf32>
      %16 = vector.broadcast %12 : vector<1x256xf32> to vector<16x256xf32>
      %17 = arith.addf %15, %16 : vector<16x256xf32>
      %cst_15 = arith.constant dense<0.000000e+00> : vector<16xf32>
      %18 = vector.multi_reduction <add>, %17, %cst_15 [1] : vector<16x256xf32> to vector<16xf32>
      %19 = vector.shape_cast %18 : vector<16xf32> to vector<16x1xf32>
      %cst_16 = arith.constant 2.560000e+02 : f32
      %20 = vector.broadcast %cst_16 : f32 to vector<16x1xf32>
      %21 = arith.divf %19, %20 : vector<16x1xf32>
      %22 = vector.broadcast %21 : vector<16x1xf32> to vector<16x256xf32>
      %23 = arith.subf %17, %22 : vector<16x256xf32>
      %24 = arith.mulf %23, %23 : vector<16x256xf32>
      %cst_17 = arith.constant dense<0.000000e+00> : vector<16xf32>
      %25 = vector.multi_reduction <add>, %24, %cst_17 [1] : vector<16x256xf32> to vector<16xf32>
      %26 = vector.shape_cast %25 : vector<16xf32> to vector<16x1xf32>
      %cst_18 = arith.constant 2.560000e+02 : f32
      %27 = vector.broadcast %cst_18 : f32 to vector<16x1xf32>
      %28 = arith.divf %26, %27 : vector<16x1xf32>
      %cst_19 = arith.constant 9.99999974E-6 : f32
      %29 = vector.broadcast %cst_19 : f32 to vector<16x1xf32>
      %30 = arith.addf %28, %29 : vector<16x1xf32>
      %31 = math.rsqrt %30 : vector<16x1xf32>
      %32 = vector.broadcast %31 : vector<16x1xf32> to vector<16x256xf32>
      %33 = arith.mulf %23, %32 : vector<16x256xf32>
      %34 = vector.broadcast %13 : vector<1x256xf32> to vector<16x256xf32>
      %35 = arith.mulf %34, %33 : vector<16x256xf32>
      %36 = vector.broadcast %14 : vector<1x256xf32> to vector<16x256xf32>
      %37 = arith.addf %35, %36 : vector<16x256xf32>
      %cst_20 = arith.constant 0.000000e+00 : f32
      %38 = vector.broadcast %cst_20 : f32 to vector<16x256xf32>
      %39 = arith.maximumf %37, %38 : vector<16x256xf32>
      %c0_21 = arith.constant 0 : index
      %c0_22 = arith.constant 0 : index
      %40 = vector.load %arg5[%c0_21, %c0_22] : memref<16x256xf32, #tpu.memory_space<vmem>>, vector<16x256xf32>
      tpu.vector_store %arg5[%c0_21, %c0_22], %39 {strides = array<i32>} : memref<16x256xf32, #tpu.memory_space<vmem>>, vector<16x256xf32>,
    } else {
    }
    return
  }
  func.func @transform_0(%arg0: i32, %arg1: i32) -> (i32, i32) {
    %c0_i32 = arith.constant 0 : i32
    return %arg0, %arg1 : i32, i32
  }
  func.func @transform_1(%arg0: i32, %arg1: i32) -> (i32, i32) {
    %c0_i32 = arith.constant 0 : i32
    %c0_i32_0 = arith.constant 0 : i32
    return %arg1, %c0_i32 : i32, i32
  }
  func.func @transform_2(%arg0: i32, %arg1: i32) -> (i32, i32) {
    %c0_i32 = arith.constant 0 : i32
    %c0_i32_0 = arith.constant 0 : i32
    %c0_i32_1 = arith.constant 0 : i32
    return %c0_i32, %c0_i32_0 : i32, i32
  }
  func.func @transform_3(%arg0: i32, %arg1: i32) -> (i32, i32) {
    %c0_i32 = arith.constant 0 : i32
    %c0_i32_0 = arith.constant 0 : i32
    return %arg0, %c0_i32 : i32, i32
  }
}

</mosaic_0001>

<bundles_post_ra>
// kernel: tpu_custom_call.1
= control target key start
LH: loop header
LB: loop body
LE: loop exit
PB: predicated region body
PF: predicated region fallthrough
CT: control target
= control target key end

     0   :  { %s1187_s0 = inlined_call_operand.hbm [shape: f32[16,1024], index: 0, kind: input, shape index: {}]   ;;  %s1188_s1 = inlined_call_operand.hbm [shape: f32[1024,256], index: 1, kind: input, shape index: {}]   ;;  %s1189_s2 = inlined_call_operand.hbm [shape: f32[8,256], index: 2, kind: input, shape index: {}]   ;;  %s1190_s3 = inlined_call_operand.hbm [shape: f32[16,256], index: 3, kind: output, shape index: {}]  }
   0x1   :  { %1191 = sst [smem:[#allocation13_spill]] %s1189_s2 }
   0x2   :  { %8 = vsyncpa [#allocation3], 0 }
   0x3   :  { %10 = vsyncpa [#allocation3 + $0x1], 0 }
   0x4   :  { %11 = vsyncpa [#allocation6], 0 }
   0x5   :  { %13 = vsyncpa [#allocation6 + $0x1], 0 }
   0x6   :  { %14 = vsyncpa [#allocation4], 0  ;;  %s984_s12 = smov 0   ;;  %s986_s13 = smov 0  }
   0x7   :  { %s988_s14 = smov 0   ;;  %s990_s15 = smov 0  }
   0x8   :  { %s992_s16 = smov 0   ;;  %s994_s17 = smov 0  }
   0x9 LB: > { %s1013_s18 = sadd.s32 4294967295, %s953_s17   ;;  %s41_s19 = sadd.s32 1, %s941_s14  ;;  %s953_s17 = sphi %s994_s17, %s20_s17   ;;  %s949_s16 = sphi %s992_s16, %s1201_s16   ;;  %s945_s15 = sphi %s990_s15, %s1200_s15   ;;  %s941_s14 = sphi %s988_s14, %s1199_s14   ;;  %s937_s13 = sphi %s986_s13, %s1198_s13   ;;  %s933_s12 = sphi %s984_s12, %s1197_s12  }
   0xa   : > { %p48_p0 = scmp.ne.s32.totalorder %s941_s14, %s937_s13  ;;  %p49_p1 = scmp.eq.s32.totalorder %s953_s17, 0 }
   0xb   : > { %p54_p2 = scmp.ne.s32.totalorder %s937_s13, %s933_s12  ;;  %p55_p3 = scmp.eq.s32.totalorder %s1013_s18, 0 }
   0xc   : > { %p1021_p4 = por %p49_p1, %p48_p0  ;;  %p659_p5 = scmp.ge.s32.totalorder %s953_s17, 1 }
   0xd   : > { %p1028_p6 = por %p55_p3, %p54_p2  ;;  %p138_p7 = scmp.lt.s32.totalorder %s953_s17, 5 }
   0xe   : > { %s1194_s2 = sld [smem:[#allocation13_spill]]  ;;  %s955_s26 = smov [#allocation7]  }
   0xf   : > { %p1036_p8 = pnand %p659_p5, %p138_p7  ;;  %s152_s27 = sshll.u32 %s955_s26, 4  ;;  %s153_s27 = int_to_ptr.vmem [resolvable:$true] %s152_s27 }
  0x10   : > { %p706_p10 = scmp.lt.s32.totalorder %s953_s17, 4  ;;  %s29_s29 = sadd.s32 1, %s949_s16 }
  0x11   : > { %p694_p9 = pneg %p1036_p8  ;;  %p30_p13 = scmp.ge.s32.totalorder %s29_s29, 4 }
  0x12   : > { %p1047_p12 = pnand %p706_p10, %p1021_p4  ;;  %s163_s30 = sand.u32 1, %s941_s14  }
  0x13   : > { %p695_p11 = pnand %p694_p9, %p55_p3  ;;  %s679_s4 = sshll.u32 %s949_s16, 4 }
  0x14   : > { %s150_s24 = sshll.u32 %s1194_s2, 4  ;;  %s1203_s29 = smov (%p30_p13, %s29_s29), 0  ;;  %s151_s24 = int_to_ptr.hbm [resolvable:$true] %s150_s24 }
  0x15   : > { %697 = dma.hbm_to_vmem [thread:$0]  (!%p695_p11), %s151_s24, 256, %s153_s27, [#allocation6]  }
  0x16   : > { %s662_s5 = sshll.u32 %s163_s30, 5  ;;  %s37_s6 = ssub.s32 %s949_s16, %s1203_s29 }
  0x17   : > { %p39_p0 = scmp.eq.s32.totalorder %s37_s6, 0  ;;  %s175_s9 = scalar_lea.hbm %s1187_s0, %s679_s4 }
  0x18   : > { %s176_s10 = sshll.u32 %s175_s9, 4  ;;  %s167_s11 = scalar_lea.vmem [#allocation2], %s662_s5  ;;  %s177_s10 = int_to_ptr.hbm [resolvable:$true] %s176_s10 }
  0x19   : > { %s178_s12 = sshll.u32 %s167_s11, 4  ;;  %s188_s22 = sand.u32 1, %s953_s17   ;;  %s179_s12 = int_to_ptr.vmem [resolvable:$true] %s178_s12 }
  0x1a   : > { %s1064_s20 = scalar_select %p39_p0, %s941_s14, %s41_s19  }
  0x1b   : > { %s164_s23 = scalar_lea.sflag [#allocation3], %s163_s30  ;;  %s956_s24 = smov 1024  }
  0x1c   : > { %s957_s26 = smov 256   ;;  %s958_s27 = smov 16  }
  0x1d   : > { %701 = dma.hbm_to_vmem [thread:$0]  (!%p1047_p12), %s177_s10, 512, %s179_s12, %s164_s23, %s956_s24, %s957_s26, %s958_s27  }
  0x1e   : > { %s665_s6 = sshll.u32 %s163_s30, 9  ;;  %s681_s2 = sshll.u32 %s949_s16, 9 }
  0x1f   : > { %s198_s5 = scalar_lea.hbm %s1188_s1, %s681_s2  ;;  %s192_s8 = scalar_lea.vmem [#allocation5], %s665_s6 }
  0x20   : > { %s201_s9 = sshll.u32 %s192_s8, 4  ;;  %s199_s19 = sshll.u32 %s198_s5, 4  ;;  %s202_s9 = int_to_ptr.vmem [resolvable:$true] %s201_s9  ;;  %s200_s19 = int_to_ptr.hbm [resolvable:$true] %s199_s19 }
  0x21   : > { %s189_s11 = scalar_lea.sflag [#allocation6], %s188_s22  ;;  %213 = sbr.rel (%p1036_p8) target bundleno = 527 (0x20f), region = 32 }
  0x22   : > { %704 = dma.hbm_to_vmem [thread:$0]  (!%p1047_p12), %s200_s19, 8192, %s202_s9, %s189_s11, %s957_s26, %s957_s26, %s958_s27  }
  0x23   : > { %s215_s10 = sand.u32 (!%p1036_p8), 1, %s937_s13  }
  0x24   : > { %s670_s30 = sshll.u32 (!%p1036_p8), %s215_s10, 5  ;;  %s216_s12 = scalar_lea.sflag (!%p1036_p8), [#allocation3], %s215_s10 }
  0x25   : > { %s1078_s23 = scalar_lea.vmem (!%p1036_p8), [#allocation2], %s670_s30 }
  0x26   : > { %916 = dma.done.wait (%p1028_p6), %s216_s12, 512  }
  0x27   : > { %918 = vsyncadd (%p1028_p6), %s216_s12, 4294966784  ;;  %s225_s2 = sand.u32 1, %s1013_s18   ;;  %s671_s28 = sshll.u32 %s215_s10, 9 }
  0x28   : > { %s226_s22 = scalar_lea.sflag [#allocation6], %s225_s2  ;;  %s1085_s24 = scalar_lea.vmem [#allocation5], %s671_s28 }
  0x29   : > { %920 = dma.done.wait (%p1028_p6), %s226_s22, 8192  }
  0x2a   : > { %922 = vsyncadd (%p1028_p6), %s226_s22, 4294959104 }
  0x2b   : > { %924 = dma.done.wait (%p55_p3), [#allocation6], 256  }
  0x2c   : > { %926 = vsyncadd (%p55_p3), [#allocation6], 4294967040  ;;  %p673_p1 = scmp.ne.s32.totalorder %s945_s15, 0 }
  0x2e   : > { %265 = sbr.rel (%p673_p1) target bundleno = 56 (0x38), region = 48 }
  0x33   : > { %v959_v0 = vmov 0.0  }
  0x34   : > { %266 = vst [vmem:[#allocation8] sm:$0xff] %v959_v0 }
  0x35   : > { %267 = vst [vmem:[#allocation8 + $0x8] sm:$0xff] %v959_v0 }
  0x36   : > { %268 = vst [vmem:[#allocation8 + $0x10] sm:$0xff] %v959_v0 }
  0x37   : > { %269 = vst [vmem:[#allocation8 + $0x18] sm:$0xff] %v959_v0 }
  0x38 PF: > { %v309_v1 = vld [vmem:[%s1085_s24 + $0xf8] sm:$0xff]  ;;  %v307_v3 = vld [vmem:[%s1085_s24 + $0xe8] sm:$0xff]  ;;  %v308_v7 = vld [vmem:[%s1085_s24 + $0xf0] sm:$0xff]  ;;  %p674_p2 = scmp.ne.s32.totalorder %s945_s15, 3 }
  0x39   : > { %v341_v2 = vld [vmem:[%s1085_s24 + $0x1f8] sm:$0xff]  ;;  %388 = vmatpush.msra.mxu2 %v309_v1  ;;  %v339_v4 = vld [vmem:[%s1085_s24 + $0x1e8] sm:$0xff]  ;;  %v340_v8 = vld [vmem:[%s1085_s24 + $0x1f0] sm:$0xff]  ;;  %342 = vmatpush.msra.mxu0 %v308_v7 }
  0x3a   : > { %411 = vmatpush.msra.mxu3 %v341_v2  ;;  %v305_v5 = vld [vmem:[%s1085_s24 + $0xd8] sm:$0xff]  ;;  %v306_v9 = vld [vmem:[%s1085_s24 + $0xe0] sm:$0xff]  ;;  %365 = vmatpush.msra.mxu1 %v340_v8  ;;  %v303_v11 = vld [vmem:[%s1085_s24 + $0xc8] sm:$0xff] }
  0x3b   : > { %v337_v6 = vld [vmem:[%s1085_s24 + $0x1d8] sm:$0xff]  ;;  %389 = vmatpush.msra.mxu2 %v307_v3  ;;  %v338_v10 = vld [vmem:[%s1085_s24 + $0x1e0] sm:$0xff]  ;;  %v335_v12 = vld [vmem:[%s1085_s24 + $0x1c8] sm:$0xff]  ;;  %343 = vmatpush.msra.mxu0 %v306_v9 }
  0x3c   : > { %412 = vmatpush.msra.mxu3 %v339_v4  ;;  %v304_v13 = vld [vmem:[%s1085_s24 + $0xd0] sm:$0xff]  ;;  %366 = vmatpush.msra.mxu1 %v338_v10  ;;  %v301_v15 = vld [vmem:[%s1085_s24 + $0xb8] sm:$0xff]  ;;  %v302_v17 = vld [vmem:[%s1085_s24 + $0xc0] sm:$0xff] }
  0x3d   : > { %390 = vmatpush.msra.mxu2 %v305_v5  ;;  %v336_v14 = vld [vmem:[%s1085_s24 + $0x1d0] sm:$0xff]  ;;  %v333_v16 = vld [vmem:[%s1085_s24 + $0x1b8] sm:$0xff]  ;;  %v334_v18 = vld [vmem:[%s1085_s24 + $0x1c0] sm:$0xff]  ;;  %344 = vmatpush.msra.mxu0 %v304_v13 }
  0x3e   : > { %413 = vmatpush.msra.mxu3 %v337_v6  ;;  %367 = vmatpush.msra.mxu1 %v336_v14  ;;  %v299_v19 = vld [vmem:[%s1085_s24 + $0xa8] sm:$0xff]  ;;  %v300_v21 = vld [vmem:[%s1085_s24 + $0xb0] sm:$0xff]  ;;  %v297_v23 = vld [vmem:[%s1085_s24 + $0x98] sm:$0xff] }
  0x3f   : > { %391 = vmatpush.msra.mxu2 %v303_v11  ;;  %v331_v20 = vld [vmem:[%s1085_s24 + $0x1a8] sm:$0xff]  ;;  %v332_v22 = vld [vmem:[%s1085_s24 + $0x1b0] sm:$0xff]  ;;  %345 = vmatpush.msra.mxu0 %v302_v17  ;;  %v329_v24 = vld [vmem:[%s1085_s24 + $0x198] sm:$0xff] }
  0x40   : > { %414 = vmatpush.msra.mxu3 %v335_v12  ;;  %368 = vmatpush.msra.mxu1 %v334_v18  ;;  %v298_v25 = vld [vmem:[%s1085_s24 + $0xa0] sm:$0xff]  ;;  %v295_v27 = vld [vmem:[%s1085_s24 + $0x88] sm:$0xff]  ;;  %v296_v29 = vld [vmem:[%s1085_s24 + $0x90] sm:$0xff] }
  0x41   : > { %392 = vmatpush.msra.mxu2 %v301_v15  ;;  %v330_v26 = vld [vmem:[%s1085_s24 + $0x1a0] sm:$0xff]  ;;  %346 = vmatpush.msra.mxu0 %v300_v21  ;;  %v327_v28 = vld [vmem:[%s1085_s24 + $0x188] sm:$0xff]  ;;  %v328_v30 = vld [vmem:[%s1085_s24 + $0x190] sm:$0xff] }
  0x42   : > { %415 = vmatpush.msra.mxu3 %v333_v16  ;;  %369 = vmatpush.msra.mxu1 %v332_v22  ;;  %v293_v31 = vld [vmem:[%s1085_s24 + $0x78] sm:$0xff]  ;;  %v294_v33 = vld [vmem:[%s1085_s24 + $0x80] sm:$0xff]  ;;  %v291_v35 = vld [vmem:[%s1085_s24 + $0x68] sm:$0xff] }
  0x43   : > { %393 = vmatpush.msra.mxu2 %v299_v19  ;;  %347 = vmatpush.msra.mxu0 %v298_v25  ;;  %v325_v32 = vld [vmem:[%s1085_s24 + $0x178] sm:$0xff]  ;;  %v326_v34 = vld [vmem:[%s1085_s24 + $0x180] sm:$0xff]  ;;  %v323_v36 = vld [vmem:[%s1085_s24 + $0x168] sm:$0xff] }
  0x44   : > { %416 = vmatpush.msra.mxu3 %v331_v20  ;;  %370 = vmatpush.msra.mxu1 %v330_v26  ;;  %v292_v37 = vld [vmem:[%s1085_s24 + $0x70] sm:$0xff]  ;;  %v289_v39 = vld [vmem:[%s1085_s24 + $0x58] sm:$0xff]  ;;  %v290_v41 = vld [vmem:[%s1085_s24 + $0x60] sm:$0xff] }
  0x45   : > { %394 = vmatpush.msra.mxu2 %v297_v23  ;;  %348 = vmatpush.msra.mxu0 %v296_v29  ;;  %v324_v38 = vld [vmem:[%s1085_s24 + $0x170] sm:$0xff]  ;;  %v321_v40 = vld [vmem:[%s1085_s24 + $0x158] sm:$0xff]  ;;  %v322_v42 = vld [vmem:[%s1085_s24 + $0x160] sm:$0xff] }
  0x46   : > { %417 = vmatpush.msra.mxu3 %v329_v24  ;;  %371 = vmatpush.msra.mxu1 %v328_v30  ;;  %v287_v43 = vld [vmem:[%s1085_s24 + $0x48] sm:$0xff]  ;;  %v288_v45 = vld [vmem:[%s1085_s24 + $0x50] sm:$0xff]  ;;  %v285_v47 = vld [vmem:[%s1085_s24 + $0x38] sm:$0xff] }
  0x47   : > { %395 = vmatpush.msra.mxu2 %v295_v27  ;;  %349 = vmatpush.msra.mxu0 %v294_v33  ;;  %v319_v44 = vld [vmem:[%s1085_s24 + $0x148] sm:$0xff]  ;;  %v320_v46 = vld [vmem:[%s1085_s24 + $0x150] sm:$0xff]  ;;  %v317_v48 = vld [vmem:[%s1085_s24 + $0x138] sm:$0xff] }
  0x48   : > { %418 = vmatpush.msra.mxu3 %v327_v28  ;;  %372 = vmatpush.msra.mxu1 %v326_v34  ;;  %v286_v49 = vld [vmem:[%s1085_s24 + $0x40] sm:$0xff]  ;;  %v283_v51 = vld [vmem:[%s1085_s24 + $0x28] sm:$0xff]  ;;  %v284_v53 = vld [vmem:[%s1085_s24 + $0x30] sm:$0xff] }
  0x49   : > { %396 = vmatpush.msra.mxu2 %v293_v31  ;;  %350 = vmatpush.msra.mxu0 %v292_v37  ;;  %v318_v50 = vld [vmem:[%s1085_s24 + $0x140] sm:$0xff]  ;;  %v315_v52 = vld [vmem:[%s1085_s24 + $0x128] sm:$0xff]  ;;  %v316_v54 = vld [vmem:[%s1085_s24 + $0x130] sm:$0xff] }
  0x4a   : > { %419 = vmatpush.msra.mxu3 %v325_v32  ;;  %373 = vmatpush.msra.mxu1 %v324_v38  ;;  %v281_v55 = vld [vmem:[%s1085_s24 + $0x18] sm:$0xff]  ;;  %v282_v57 = vld [vmem:[%s1085_s24 + $0x20] sm:$0xff]  ;;  %v279_v59 = vld [vmem:[%s1085_s24 + $0x8] sm:$0xff] }
  0x4b   : > { %397 = vmatpush.msra.mxu2 %v291_v35  ;;  %351 = vmatpush.msra.mxu0 %v290_v41  ;;  %v313_v56 = vld [vmem:[%s1085_s24 + $0x118] sm:$0xff]  ;;  %v314_v58 = vld [vmem:[%s1085_s24 + $0x120] sm:$0xff]  ;;  %v311_v60 = vld [vmem:[%s1085_s24 + $0x108] sm:$0xff] }
  0x4c   : > { %420 = vmatpush.msra.mxu3 %v323_v36  ;;  %374 = vmatpush.msra.mxu1 %v322_v42  ;;  %v274_v61 = vld [vmem:[%s1078_s23] sm:$0xff]  ;;  %v275_v62 = vld [vmem:[%s1078_s23 + $0x8] sm:$0xff]  ;;  %v280_v63 = vld [vmem:[%s1085_s24 + $0x10] sm:$0xff] }
  0x4d   : > { %398 = vmatpush.msra.mxu2 %v289_v39  ;;  %352 = vmatpush.msra.mxu0 %v288_v45  ;;  %v312_v0 = vld [vmem:[%s1085_s24 + $0x110] sm:$0xff]  ;;  %v278_v1 = vld [vmem:[%s1085_s24] sm:$0xff]  ;;  %v277_v4 = vld [vmem:[%s1078_s23 + $0x18] sm:$0xff] }
  0x4e   : > { %421 = vmatpush.msra.mxu3 %v321_v40  ;;  %375 = vmatpush.msra.mxu1 %v320_v46  ;;  %v310_v2 = vld [vmem:[%s1085_s24 + $0x100] sm:$0xff]  ;;  %v276_v3 = vld [vmem:[%s1078_s23 + $0x10] sm:$0xff]  ;;  %v271_v10 = vld [vmem:[#allocation8 + $0x8] sm:$0xff] }
  0x4f   : > { %399 = vmatpush.msra.mxu2 %v287_v43  ;;  %353 = vmatpush.msra.mxu0 %v286_v49  ;;  %v270_v6 = vld [vmem:[#allocation8] sm:$0xff]  ;;  %v272_v16 = vld [vmem:[#allocation8 + $0x10] sm:$0xff]  ;;  %v273_v20 = vld [vmem:[#allocation8 + $0x18] sm:$0xff] }
  0x50   : > { %422 = vmatpush.msra.mxu3 %v319_v44  ;;  %376 = vmatpush.msra.mxu1 %v318_v50 }
  0x51   : > { %400 = vmatpush.msra.mxu2 %v285_v47  ;;  %354 = vmatpush.msra.mxu0 %v284_v53 }
  0x52   : > { %423 = vmatpush.msra.mxu3 %v317_v48  ;;  %377 = vmatpush.msra.mxu1 %v316_v54 }
  0x53   : > { %401 = vmatpush.msra.mxu2 %v283_v51  ;;  %355 = vmatpush.msra.mxu0 %v282_v57 }
  0x54   : > { %424 = vmatpush.msra.mxu3 %v315_v52  ;;  %378 = vmatpush.msra.mxu1 %v314_v58 }
  0x55   : > { %402 = vmatpush.msra.mxu2 %v281_v55  ;;  %356 = vmatpush.msra.mxu0 %v280_v63 }
  0x56   : > { %425 = vmatpush.msra.mxu3 %v313_v56  ;;  %379 = vmatpush.msra.mxu1 %v312_v0 }
  0x57   : > { %403 = vmatpush.msra.mxu2 %v279_v59  ;;  %357 = vmatpush.msra.mxu0 %v278_v1 }
  0x58   : > { %426 = vmatpush.msra.mxu3 %v311_v60  ;;  %404 = vmatmul.f32.vlgmr.msra.gmra.mxu2 %v274_v61 }
  0x59   : > { %427 = vmatmul.f32.vlgmr.msra.gmra.mxu3 %v275_v62  ;;  %380 = vmatpush.msra.mxu1 %v310_v2 }
  0x5a   : > { %358 = vmatmul.f32.vlgmr.msra.gmra.mxu0 %v274_v61  ;;  %381 = vmatmul.f32.vlgmr.msra.gmra.mxu1 %v275_v62 }
  0x60   : > { %407 = vmatmul.f32.gmra.mxu2 %v276_v3 }
  0x61   : > { %430 = vmatmul.f32.gmra.mxu3 %v277_v4 }
  0x62   : > { %361 = vmatmul.f32.gmra.mxu0 %v276_v3  ;;  %384 = vmatmul.f32.gmra.mxu1 %v277_v4 }
  0xd7   : > { %v359_v5 = vpop.f32.mrf.mxu0  ;;  %v382_v7 = vpop.f32.mrf.mxu1 }
  0xd8   : > { %v383_v8 = vadd.f32 %v382_v7, %v359_v5 }
  0xda   : > { %v434_v12 = vadd.f32 %v383_v8, %v270_v6 }
  0xdb   : > { %v405_v9 = vpop.f32.mrf.mxu2 }
  0xdc   : > { %v428_v11 = vpop.f32.mrf.mxu3  ;;  %438 = vst [vmem:[#allocation8] sm:$0xff] %v434_v12 }
  0xdd   : > { %v429_v13 = vadd.f32 %v428_v11, %v405_v9 }
  0xdf   : > { %v435_v14 = vadd.f32 %v429_v13, %v271_v10  ;;  %v362_v15 = vpop.f32.mrf.mxu0  ;;  %v385_v17 = vpop.f32.mrf.mxu1 }
  0xe0   : > { %v386_v18 = vadd.f32 %v385_v17, %v362_v15 }
  0xe1   : > { %439 = vst [vmem:[#allocation8 + $0x8] sm:$0xff] %v435_v14 }
  0xe2   : > { %v436_v22 = vadd.f32 %v386_v18, %v272_v16 }
  0xe3   : > { %v408_v19 = vpop.f32.mrf.mxu2 }
  0xe4   : > { %v431_v21 = vpop.f32.mrf.mxu3  ;;  %440 = vst [vmem:[#allocation8 + $0x10] sm:$0xff] %v436_v22 }
  0xe5   : > { %v432_v23 = vadd.f32 %v431_v21, %v408_v19  ;;  %445 = sbr.rel (%p674_p2) target bundleno = 521 (0x209), region = 52 }
  0xe7   : > { %v437_v24 = vadd.f32 %v432_v23, %v273_v20 }
  0xe9   : > { %441 = vst [vmem:[#allocation8 + $0x18] sm:$0xff] %v437_v24 }
  0xea   : > { %v446_v25 = vld [vmem:[#allocation7] ss:$8 sm:$0x3]  ;;  %v451_v26 = vld [vmem:[#allocation8] sm:$0xff]  ;;  %v452_v27 = vld [vmem:[#allocation8 + $0x8] sm:$0xff]  ;;  %v960_v38 = vmov 256.0  }
  0xeb   : > { %v456_v28 = vperm.slane %v446_v25, 0  ;;  %v457_v29 = vperm.slane %v446_v25, 1  ;;  %v453_v32 = vld [vmem:[#allocation8 + $0x10] sm:$0xff]  ;;  %767 = vrcp.f32 %v960_v38 }
  0xec   : > { %v448_v5 = vld [vmem:[#allocation7 + $0x1] ss:$8 sm:$0x3]  ;;  %v450_v8 = vld [vmem:[#allocation7 + $0x2] ss:$8 sm:$0x3] }
  0xed   : > { %v460_v30 = vadd.f32 %v456_v28, %v451_v26  ;;  %v461_v31 = vadd.f32 %v457_v29, %v452_v27  ;;  %v462_v35 = vadd.f32 %v456_v28, %v453_v32  ;;  %v522_v11 = vperm.slane %v448_v5, 0 }
  0xee   : > { %v523_v12 = vperm.slane %v448_v5, 1  ;;  %v531_v15 = vperm.slane %v450_v8, 0  ;;  %v532_v16 = vperm.slane %v450_v8, 1 }
  0xef   : > { %v464_v34 = vadd.f32 %v461_v31, %v460_v30 }
  0xf0   : > { %v454_v33 = vld [vmem:[#allocation8 + $0x18] sm:$0xff] }
  0xf1   : > { %465 = vadd.xlane.f32.xlu0 %v464_v34  ;;  %v463_v36 = vadd.f32 %v457_v29, %v454_v33  ;;  %v768_v39 = vpop.eup %767 }
  0xf2   : > { %v471_v40 = vmul.f32 256.0, %v768_v39  ;;  %vm475_vm0 = vweird.f32 %v768_v39 }
  0xf3   : > { %v467_v37 = vadd.f32 %v463_v36, %v462_v35 }
  0xf4   : > { %v472_v41 = vsub.f32 1.0, %v471_v40 }
  0xf6   : > { %v473_v42 = vmul.f32 %v768_v39, %v472_v41 }
  0xf8   : > { %v474_v43 = vadd.f32 %v768_v39, %v473_v42 }
  0xf9   : > { %468 = vadd.xlane.f32.xlu0 %v467_v37 }
  0xfa   : > { %v476_v44 = vsel %vm475_vm0, %v768_v39, %v474_v43 }
 0x164   : > { %v466_v45 = vpop.xlane.xlu0 %465 }
 0x165   : > { %v477_v46 = vmul.f32 %v476_v44, %v466_v45 }
 0x167   : > { %v479_v47 = vsub.f32 %v460_v30, %v477_v46  ;;  %v480_v48 = vsub.f32 %v461_v31, %v477_v46 }
 0x169   : > { %v483_v49 = vmul.f32 %v479_v47, %v479_v47  ;;  %v484_v50 = vmul.f32 %v480_v48, %v480_v48 }
 0x16b   : > { %v487_v51 = vadd.f32 %v484_v50, %v483_v49 }
 0x16c   : > { %v469_v52 = vpop.xlane.xlu0 %468 }
 0x16d   : > { %v478_v53 = vmul.f32 %v476_v44, %v469_v52  ;;  %488 = vadd.xlane.f32.xlu1 %v487_v51 }
 0x16f   : > { %v481_v54 = vsub.f32 %v462_v35, %v478_v53  ;;  %v482_v55 = vsub.f32 %v463_v36, %v478_v53 }
 0x171   : > { %v485_v56 = vmul.f32 %v481_v54, %v481_v54  ;;  %v486_v57 = vmul.f32 %v482_v55, %v482_v55 }
 0x173   : > { %v490_v58 = vadd.f32 %v486_v57, %v485_v56 }
 0x175   : > { %491 = vadd.xlane.f32.xlu1 %v490_v58 }
 0x1e0   : > { %v489_v59 = vpop.xlane.xlu1 %488 }
 0x1e1   : > { %v493_v60 = vmul.f32 %v489_v59, %v476_v44 }
 0x1e3   : > { %v495_v61 = vadd.f32 1e-05, %v493_v60 }
 0x1e5   : > { %769 = vrsqrt.f32 %v495_v61  ;;  %vm503_vm2 = vweird.f32 %v495_v61 }
 0x1e8   : > { %v492_v62 = vpop.xlane.xlu1 %491 }
 0x1e9   : > { %v494_v63 = vmul.f32 %v492_v62, %v476_v44 }
 0x1eb   : > { %v770_v0 = vpop.eup %769  ;;  %v496_v1 = vadd.f32 1e-05, %v494_v63 }
 0x1ec   : > { %v498_v2 = vmul.f32 %v770_v0, %v495_v61  ;;  %vm504_vm1 = vweird.f32 %v770_v0 }
 0x1ed   : > { %771 = vrsqrt.f32 %v496_v1  ;;  %vm505_vm3 = vmor %vm503_vm2, %vm504_vm1  ;;  %vm513_vm5 = vweird.f32 %v496_v1 }
 0x1ee   : > { %v499_v3 = vmul.f32 %v770_v0, %v498_v2 }
 0x1f0   : > { %v500_v4 = vmul.f32 0.5, %v499_v3 }
 0x1f2   : > { %v501_v6 = vsub.f32 1.5, %v500_v4 }
 0x1f3   : > { %v772_v7 = vpop.eup %771 }
 0x1f4   : > { %v502_v9 = vmul.f32 %v770_v0, %v501_v6  ;;  %v508_v10 = vmul.f32 %v772_v7, %v496_v1  ;;  %vm514_vm4 = vweird.f32 %v772_v7 }
 0x1f5   : > { %vm515_vm6 = vmor %vm513_vm5, %vm514_vm4 }
 0x1f6   : > { %v506_v13 = vsel %vm505_vm3, %v770_v0, %v502_v9  ;;  %v509_v14 = vmul.f32 %v772_v7, %v508_v10 }
 0x1f7   : > { %v517_v17 = vmul.f32 %v506_v13, %v479_v47  ;;  %v518_v18 = vmul.f32 %v506_v13, %v480_v48 }
 0x1f8   : > { %v510_v19 = vmul.f32 0.5, %v509_v14 }
 0x1f9   : > { %v526_v20 = vmul.f32 %v522_v11, %v517_v17  ;;  %v527_v21 = vmul.f32 %v523_v12, %v518_v18 }
 0x1fa   : > { %v511_v22 = vsub.f32 1.5, %v510_v19 }
 0x1fb   : > { %v535_v23 = vadd.f32 %v531_v15, %v526_v20  ;;  %v536_v24 = vadd.f32 %v532_v16, %v527_v21 }
 0x1fc   : > { %v512_v25 = vmul.f32 %v772_v7, %v511_v22 }
 0x1fd   : > { %v539_v26 = vmax.f32 %v535_v23, 0.0  ;;  %v540_v27 = vmax.f32 %v536_v24, 0.0 }
 0x1fe   : > { %v516_v28 = vsel %vm515_vm6, %v772_v7, %v512_v25 }
 0x1ff   : > { %543 = vst [vmem:[#allocation8] sm:$0xff] %v539_v26  ;;  %v519_v29 = vmul.f32 %v516_v28, %v481_v54  ;;  %v520_v30 = vmul.f32 %v516_v28, %v482_v55 }
 0x200   : > { %544 = vst [vmem:[#allocation8 + $0x8] sm:$0xff] %v540_v27 }
 0x201   : > { %v528_v31 = vmul.f32 %v522_v11, %v519_v29  ;;  %v529_v32 = vmul.f32 %v523_v12, %v520_v30 }
 0x203   : > { %v537_v33 = vadd.f32 %v531_v15, %v528_v31  ;;  %v538_v34 = vadd.f32 %v532_v16, %v529_v32 }
 0x205   : > { %v541_v35 = vmax.f32 %v537_v33, 0.0  ;;  %v542_v36 = vmax.f32 %v538_v34, 0.0 }
 0x207   : > { %545 = vst [vmem:[#allocation8 + $0x10] sm:$0xff] %v541_v35 }
 0x208   : > { %546 = vst [vmem:[#allocation8 + $0x18] sm:$0xff] %v542_v36 }
 0x209 PF: > { %p708_p3 = scmp.eq.s32.totalorder %s1013_s18, 3  ;;  %s558_s25 = sshll.u32 %s1190_s3, 4  ;;  %s559_s25 = int_to_ptr.hbm [resolvable:$true] %s558_s25 }
 0x20a   : > { %s961_s26 = smov [#allocation8]   ;;  %s962_s6 = smov 256  }
 0x20b   : > { %s556_s27 = sshll.u32 %s961_s26, 4  ;;  %s963_s7 = smov 16   ;;  %s557_s27 = int_to_ptr.vmem [resolvable:$true] %s556_s27 }
 0x20c   : > { %691 = dma.vmem_to_hbm [thread:$0]  (%p708_p3), %s557_s27, 512, %s559_s25, [#allocation4], %s962_s6, %s962_s6, %s963_s7  }
 0x20d   : > { %928 = dma.done.wait (%p708_p3), [#allocation4], 512  }
 0x20e   : > { %930 = vsyncadd (%p708_p3), [#allocation4], 4294966784 }
 0x20f PF: > { %s20_s17 = sadd.s32 1, %s953_s17   ;;  %s1197_s12 = smov %s937_s13 }
 0x210   : > { %p17_p4 = scmp.ge.s32.totalorder %s20_s17, 6   ;;  %s1198_s13 = smov %s941_s14 }
 0x211   : > { %s1199_s14 = smov %s1064_s20  ;;  %s1200_s15 = smov %s949_s16 }
 0x212   : > { %s1201_s16 = smov %s1203_s29  ;;  %19 = sbr.rel (!%p17_p4) target bundleno = 9 (0x9), region = 97 }
 0x217   :  { %575 = vsyncpa [#allocation3], 1 }
 0x218   :  { %577 = vsyncpa [#allocation3 + $0x1], 1 }
 0x219   :  { %578 = vsyncpa [#allocation6], 1 }
 0x21a   :  { %580 = vsyncpa [#allocation6 + $0x1], 1 }
 0x21b   :  { %581 = vsyncpa [#allocation4], 1 }
 0x21c   :  { %583 = vsyncpa [#allocation4 + $0x1], 1 }

</bundles_post_ra>
